<compile_context>
chip_gen: v6e
topology: v6e:2x2x1
jax: 0.10.0
libtpu: 0.0.40
codegen_flags: <defaults>
</compile_context>

<pallas_src>
import functools
import math

import jax
import jax.numpy as jnp
from jax.experimental import pallas as pl
from jax.experimental.pallas import tpu as pltpu  # noqa: F401  (not needed at this size)

F32 = jnp.float32


# ----------------------------- Pallas kernel -------------------------------

def _downconv1d_kernel(x_ref, v_ref, g_ref, b_ref, o_ref, *, B, C, O, L):
    # x_ref: (B, C, L)   full NCL input, one block
    # v_ref: (O, C)      weight_norm direction (kernel_size=1 squeezed)
    # g_ref: (O, 1)      weight_norm magnitude
    # b_ref: (O, 1)      conv bias
    # o_ref: (B*O, L)    flattened output -> full (8,128) f32 tile store
    v = v_ref[...]
    # weight_norm(dim=0): w[o, :] = g[o] * v[o, :] / ||v[o, :]||_2  (exact, once)
    norm = jnp.sqrt(jnp.sum(v * v, axis=1, keepdims=True))           # (O, 1)
    w = v * (g_ref[...] / norm)                                      # (O, C)

    # 1x1 conv == channel matmul in NCL layout; one batched dot_general for
    # the whole batch, f32 accumulation on the MXU.
    wb = jnp.broadcast_to(w, (B, O, C))
    y = jnp.einsum("boc,bcl->bol", wb, x_ref[...],
                   preferred_element_type=jnp.float32)               # (B, O, L)
    y = y + b_ref[...][None]                                         # (O,1) bcast
    o_ref[...] = y.reshape(B * O, L)                                 # dense store


def down_conv1d(x, weight_v, weight_g, bias_col):
    """Forward of DownConv1d: weight-normed Conv1d(C, C//2, kernel_size=1).

    x:        (B, C, L)  float32, NCL layout (PyTorch Conv1d layout)
    weight_v: (O, C)     float32  (= weight_v.squeeze(-1), O = C // 2)
    weight_g: (O, 1)     float32
    bias_col: (O, 1)     float32
    returns   (B, O, L)  float32
    """
    B, C, L = x.shape
    O = weight_v.shape[0]
    kernel = functools.partial(_downconv1d_kernel, B=B, C=C, O=O, L=L)
    y_flat = pl.pallas_call(
        kernel,
        out_shape=jax.ShapeDtypeStruct((B * O, L), F32),
    )(x, weight_v, weight_g, bias_col)
    return y_flat.reshape(B, O, L)   # free, contiguous reshape


# ----------------------------- parameter init ------------------------------

def init_downconv1d(key, in_channels):
    """Mimics Conv1d_with_init(in_channels, in_channels//2, 1) + weight_norm.

    Returns weights already in kernel-ready layout (one-time reshape here, so
    the per-call wrapper has zero layout ops).
    """
    assert in_channels % 2 == 0
    out_channels = in_channels // 2
    kw, kb = jax.random.split(key)
    # kaiming-normal-like init of the underlying 1x1 conv weight (O, C, 1)
    w0 = jax.random.normal(kw, (out_channels, in_channels, 1), F32) * math.sqrt(
        2.0 / in_channels
    )
    # weight_norm(dim=0): v <- w0, g <- ||w0|| over dims (1, 2)
    weight_v = w0
    weight_g = jnp.sqrt(jnp.sum(w0 * w0, axis=(1, 2), keepdims=True))  # (O,1,1)
    bound = 1.0 / math.sqrt(in_channels)
    bias = jax.random.uniform(kb, (out_channels,), F32, -bound, bound)
    return {
        "v": weight_v.reshape(out_channels, in_channels),  # (O, C)
        "g": weight_g.reshape(out_channels, 1),            # (O, 1)
        "b": bias.reshape(out_channels, 1),                # (O, 1)
    }


# ----------------------------- reference (plain JAX) ------------------------

def down_conv1d_reference(x, v, g, b):
    w = v * (g / jnp.sqrt(jnp.sum(v * v, axis=1, keepdims=True)))      # (O, C)
    return jnp.einsum("oc,bcl->bol", w, x) + b[None, :, :]             # (B, O, L)


# ----------------------------- main -----------------------------------------

if __name__ == "__main__":
    key = jax.random.PRNGKey(0)
    kx, kp = jax.random.split(key)

    BATCH = 2
    IN_CHANNELS = 8          # must be even
    SEQ_LEN = 128            # lane-dense output (last dim == 128)

    params = init_downconv1d(kp, IN_CHANNELS)
    x = jax.random.normal(kx, (BATCH, IN_CHANNELS, SEQ_LEN), F32)

    fwd = jax.jit(down_conv1d)
    y = fwd(x, params["v"], params["g"], params["b"])
    jax.block_until_ready(y)

    assert y.shape == (BATCH, IN_CHANNELS // 2, SEQ_LEN)

    y_ref = down_conv1d_reference(x, params["v"], params["g"], params["b"])
    assert jnp.allclose(y, y_ref, rtol=1e-5, atol=1e-5), (
        float(jnp.max(jnp.abs(y - y_ref)))
    )

    print("KERNEL_OK")
</pallas_src>

<mosaic_0001>
module attributes {stable_mosaic.version = 11 : i64} {
  func.func @_downconv1d_kernel(%arg0: memref<2x8x128xf32, #tpu.memory_space<vmem>>, %arg1: memref<4x8xf32, #tpu.memory_space<vmem>>, %arg2: memref<4x1xf32, #tpu.memory_space<vmem>>, %arg3: memref<4x1xf32, #tpu.memory_space<vmem>>, %arg4: memref<8x128xf32, #tpu.memory_space<vmem>>) attributes {dimension_semantics = [], scalar_prefetch = 0 : i64, scratch_operands = 0 : i64, tpu.core_type = #tpu.core_type<tc>} {
    %c0 = arith.constant 0 : index
    %c0_0 = arith.constant 0 : index
    %0 = vector.load %arg1[%c0, %c0_0] : memref<4x8xf32, #tpu.memory_space<vmem>>, vector<4x8xf32>
    %1 = arith.mulf %0, %0 : vector<4x8xf32>
    %cst = arith.constant dense<0.000000e+00> : vector<4xf32>
    %2 = vector.multi_reduction <add>, %1, %cst [1] : vector<4x8xf32> to vector<4xf32>
    %3 = vector.shape_cast %2 : vector<4xf32> to vector<4x1xf32>
    %4 = math.sqrt %3 : vector<4x1xf32>
    %c0_1 = arith.constant 0 : index
    %c0_2 = arith.constant 0 : index
    %5 = vector.load %arg2[%c0_1, %c0_2] : memref<4x1xf32, #tpu.memory_space<vmem>>, vector<4x1xf32>
    %6 = arith.divf %5, %4 : vector<4x1xf32>
    %7 = vector.broadcast %6 : vector<4x1xf32> to vector<4x8xf32>
    %8 = arith.mulf %0, %7 : vector<4x8xf32>
    %9 = vector.shape_cast %8 : vector<4x8xf32> to vector<1x4x8xf32>
    %10 = vector.broadcast %9 : vector<1x4x8xf32> to vector<2x4x8xf32>
    %c0_3 = arith.constant 0 : index
    %c0_4 = arith.constant 0 : index
    %c0_5 = arith.constant 0 : index
    %11 = vector.load %arg0[%c0_3, %c0_4, %c0_5] : memref<2x8x128xf32, #tpu.memory_space<vmem>>, vector<2x8x128xf32>
    "tpu.trace_start"() <{level = 10 : i32, message = "boc,bcl->bol"}> : () -> ()
    %cst_6 = arith.constant dense<0.000000e+00> : vector<2x4x128xf32>
    %12 = tpu.matmul %10, %11, %cst_6 {dimension_numbers = #tpu.dot_dimension_numbers<[2], [1], [1], [2], [0, 0, 0, 1, 1, 2], [0], [0]>} : vector<2x4x8xf32>, vector<2x8x128xf32>, vector<2x4x128xf32> -> vector<2x4x128xf32>
    "tpu.trace_stop"() : () -> ()
    %c0_7 = arith.constant 0 : index
    %c0_8 = arith.constant 0 : index
    %13 = vector.load %arg3[%c0_7, %c0_8] : memref<4x1xf32, #tpu.memory_space<vmem>>, vector<4x1xf32>
    %14 = vector.shape_cast %13 : vector<4x1xf32> to vector<1x4x1xf32>
    %15 = vector.broadcast %14 : vector<1x4x1xf32> to vector<2x4x128xf32>
    %16 = arith.addf %12, %15 : vector<2x4x128xf32>
    %17 = vector.shape_cast %16 : vector<2x4x128xf32> to vector<8x128xf32>
    %c0_9 = arith.constant 0 : index
    %c0_10 = arith.constant 0 : index
    %18 = vector.load %arg4[%c0_9, %c0_10] : memref<8x128xf32, #tpu.memory_space<vmem>>, vector<8x128xf32>
    tpu.vector_store %arg4[%c0_9, %c0_10], %17 {strides = array<i32>} : memref<8x128xf32, #tpu.memory_space<vmem>>, vector<8x128xf32>,
    return
  }
}

</mosaic_0001>

<bundles_post_ra>
// kernel: down_conv1d.1
= control target key start
LH: loop header
LB: loop body
LE: loop exit
PB: predicated region body
PF: predicated region fallthrough
CT: control target
= control target key end

     0   :  { %9 = vsyncpa [#allocation3], 0  ;;  %s346_s0 = inlined_call_operand.hbm [shape: f32[2,8,128], index: 0, kind: input, shape index: {}]   ;;  %s347_s1 = inlined_call_operand.vmem [shape: f32[4,8], index: 1, kind: input, shape index: {}]   ;;  %s348_s2 = inlined_call_operand.vmem [shape: f32[4,1], index: 2, kind: input, shape index: {}]   ;;  %s349_s3 = inlined_call_operand.vmem [shape: f32[4,1], index: 3, kind: input, shape index: {}]   ;;  %s350_s4 = inlined_call_operand.hbm [shape: f32[8,128], index: 4, kind: output, shape index: {}]  }
   0x1   :  { %10 = vsyncpa [#allocation4], 0  ;;  %s299_s15 = smov [#allocation2]  }
   0x2   :  { %s16_s16 = sshll.u32 %s299_s15, 4  ;;  %s17_s16 = int_to_ptr.vmem [resolvable:$true] %s16_s16 }
   0x3   :  { %s263_s17 = scalar_lea.vmem %s17_s16, 256  ;;  %p268_p1 = scmp.lt.s32.totalorder %s17_s16, %s17_s16 }
   0x4   :  { %p264_p0 = scmp.ne.s32.totalorder %s17_s16, %s263_s17  ;;  %p269_p2 = scmp.lt.s32.totalorder %s263_s17, %s263_s17 }
   0x6   :  { %p270_p3 = por %p269_p2, %p268_p1 }
   0x8   :  { %p271_p4 = pnand %p270_p3, %p264_p0 }
   0xa   :  { %274 = shalt.err (!%p271_p4)
}
   0xb   :  { %s300_s18 = smov 128   ;;  %s301_s19 = smov 8  }
   0xc   :  { %22 = dma.hbm_to_vmem [thread:$0]  %s346_s0, 256, %s17_s16, [#allocation3], %s300_s18, %s300_s18, %s301_s19  }
   0xd   :  { %295 = dma.done.wait [#allocation3], 256  }
   0xe   :  { %296 = vsyncadd [#allocation3], 4294967040  ;;  %v32_v0 = vld [vmem:[%s347_s1] sm:$0xf]  ;;  %vm34_vm0 = vcmask 60416   ;;  %v302_v3 = vmov 0  }
   0xf   :  { %v33_v1 = vmul.f32 %v32_v0, %v32_v0  ;;  %249 = vset.pattern.permute.xlu0 %v302_v3  ;;  %250 = vset.pattern.permute.xlu1 %v302_v3  ;;  %v45_v10 = vld [vmem:[%s348_s2] sm:$0xf]  ;;  %v303_v11 = vmov 0.0   ;;  %v55_v13 = vld [vmem:[#allocation2 + $0x8] sm:$0xff]  ;;  %vm304_vm3 = vmmov 0   ;;  %vm62_vm4 = vcmask 64512  }
  0x10   :  { %232 = vmatprep.subr.mxu0 %v303_v11  ;;  %237 = vmatprep.subr.mxu1 %v303_v11  ;;  %v54_v12 = vld [vmem:[#allocation2] sm:$0xff]  ;;  %s305_s2 = smov [#allocation5]  }
  0x11   :  { %v35_v2 = vsel %vm34_vm0, %v33_v1, 0.0  ;;  %233 = vmatpush3.msra.mxu0 %v54_v12  ;;  %234 = vmatprep.mubr.msk.f32.mxu0 %vm304_vm3, %v303_v11  ;;  %v56_v16 = vld [vmem:[%s349_s3] sm:$0xf]  ;;  %s217_s26 = sshll.u32 %s305_s2, 4  ;;  %s218_s26 = int_to_ptr.vmem [resolvable:$true] %s217_s26 }
  0x12   :  { %36 = vadd.xlane.f32.xlu0 %v35_v2  ;;  %238 = vmatpush3.msra.mxu1 %v55_v13  ;;  %s275_s3 = scalar_lea.vmem %s218_s26, 128  ;;  %p280_p6 = scmp.lt.s32.totalorder %s218_s26, %s218_s26 }
  0x13   :  { %239 = vmatprep.mubr.msk.f32.mxu1 %vm304_vm3, %v303_v11  ;;  %59 = vperm.xlu1 %250, %v56_v16   ;;  %p276_p5 = scmp.ne.s32.totalorder %s218_s26, %s275_s3  ;;  %p281_p7 = scmp.lt.s32.totalorder %s275_s3, %s275_s3 }
  0x15   :  { %p282_p8 = por %p281_p7, %p280_p6 }
  0x17   :  { %p283_p9 = pnand %p282_p8, %p276_p5 }
  0x8e   :  { %v60_v19 = vpop.permute.xlu1 %59 }
  0x9b   :  { %v37_v4 = vpop.xlane.xlu0 %36 }
  0x9c   :  { %251 = vrsqrt.f32 %v37_v4  ;;  %vm40_vm1 = vcmp.eq.f32.partialorder %v37_v4, inf  ;;  %v43_v7 = vand.u32 2147483648, %v37_v4  ;;  %vm42_vm2 = vcmp.eq.f32.partialorder %v37_v4, 0.0 }
  0xa9   :  { %v252_v5 = vpop.eup %251 }
  0xaa   :  { %v39_v6 = vmul.f32 %v252_v5, %v37_v4 }
  0xac   :  { %v41_v8 = vsel %vm40_vm1, %v37_v4, %v39_v6 }
  0xad   :  { %v44_v9 = vsel %vm42_vm2, %v43_v7, %v41_v8 }
  0xae   :  { %253 = vrcp.f32 %v44_v9 }
  0xbb   :  { %v254_v14 = vpop.eup %253 }
  0xbc   :  { %v47_v15 = vmul.f32 %v254_v14, %v45_v10 }
  0xbe   :  { %50 = vperm.xlu0 %249, %v47_v15  }
 0x139   :  { %v51_v17 = vpop.permute.xlu0 %50 }
 0x13a   :  { %v53_v18 = vmul.f32 %v51_v17, %v32_v0 }
 0x13c   :  { %235 = vmatmul.mubr.msk.f32.vlgmr.msra.gmra.mxu0 %vm62_vm4, %v53_v18  ;;  %240 = vmatmul.mubr.msk.f32.vlgmr.msra.gmra.mxu1 %vm62_vm4, %v53_v18 }
 0x1fc   :  { %v132_v20 = vpop.f32.mrf.mxu0  ;;  %v202_v21 = vpop.f32.mrf.mxu1 }
 0x1fd   :  { %v133_v22 = vadd.f32 %v132_v20, %v60_v19  ;;  %v203_v23 = vadd.f32 %v202_v21, %v60_v19 }
 0x1fe   :  { %v236_v24 = vpop.f32.mrf.mxu0  ;;  %v241_v25 = vpop.f32.mrf.mxu1 }
 0x1ff   :  { %v208_v26 = vcombine.low %v133_v22, %v203_v23 }
 0x201   :  { %210 = vst [vmem:[#allocation5] sm:$0xff] %v208_v26 }
 0x202   :  { %286 = shalt.err (!%p283_p9)
}
 0x203   :  { %220 = dma.vmem_to_hbm [thread:$0]  %s218_s26, 128, %s350_s4, [#allocation4]  }
 0x204   :  { %297 = dma.done.wait [#allocation4], 128  }
 0x205   :  { %298 = vsyncadd [#allocation4], 4294967168 }
 0x206   :  { %224 = vsyncpa [#allocation3], 1 }
 0x207   :  { %225 = vsyncpa [#allocation4], 1 }

</bundles_post_ra>
